<compile_context>
chip_gen: v6e
topology: v6e:2x2x1
jax: 0.10.0
libtpu: 0.0.40
codegen_flags: <defaults>
</compile_context>

<pallas_src>
import functools

import jax
import jax.numpy as jnp
from jax.experimental import pallas as pl
from jax.experimental.pallas import tpu as pltpu

BN_EPS = 1e-5


def mlp_kernel(xt_ref, w1t_ref, b1_ref, w2t_ref, b2_ref, w3_ref, b3_ref, o_ref):
    # xt_ref : (D,  T)  activations, batch on the lane axis
    # w1t    : (H1, D)  b1: (H1, 1)
    # w2t    : (H2, H1) b2: (H2, 1)   (BN1 folded in)
    # w3     : (H2, 1)  b3: SMEM (1,) (BN2 folded in)
    xt = xt_ref[...]

    # fc1 + ReLU   (dropout1 = identity in eval mode)
    h1 = jnp.dot(w1t_ref[...], xt, preferred_element_type=jnp.float32)
    h1 = jnp.maximum(h1 + b1_ref[...], 0.0)                       # (H1, T), f32

    # fc2 (BN1 folded) + ReLU   (dropout2 = identity in eval mode)
    h1 = h1.astype(w2t_ref.dtype)                                 # bf16 cast only if enabled
    h2 = jnp.dot(w2t_ref[...], h1, preferred_element_type=jnp.float32)
    h2 = jnp.maximum(h2 + b2_ref[...], 0.0)                       # (H2, T), f32

    # fc3 (BN2 folded): single output column -> VPU broadcast-mul + XLU sublane reduce
    out = jnp.sum(h2 * w3_ref[...], axis=0, keepdims=True) + b3_ref[0]
    o_ref[...] = out.astype(o_ref.dtype)                          # (1, T), lane-dense


@functools.partial(jax.jit, static_argnames=("batch_tile", "use_bf16"))
def mlp_forward(x, params, *, batch_tile=256, use_bf16=False):
    assert batch_tile >= 128 and batch_tile % 128 == 0, "batch_tile must be a multiple of 128"
    B, D = x.shape
    H1 = params["w1"].shape[1]
    H2 = params["w2"].shape[1]

    # ---- Fold eval-mode BatchNorms into the following linear layers (exact) ----
    scale1 = params["g1"] * jax.lax.rsqrt(params["v1"] + BN_EPS)          # (1, H1)
    shift1 = params["be1"] - params["m1"] * scale1                        # (1, H1)
    w2f = params["w2"] * scale1.reshape(H1, 1)                            # (H1, H2)
    b2f = shift1 @ params["w2"] + params["b2"]                            # (1, H2)

    scale2 = params["g2"] * jax.lax.rsqrt(params["v2"] + BN_EPS)          # (1, H2)
    shift2 = params["be2"] - params["m2"] * scale2                        # (1, H2)
    w3f = params["w3"] * scale2.reshape(H2, 1)                            # (H2, 1)
    b3f = (shift2 @ params["w3"] + params["b3"]).reshape(1)               # (1,)   SMEM scalar

    # ---- Transposed, lane-dense layout for the kernel ----
    mm_dtype = jnp.bfloat16 if use_bf16 else jnp.float32
    w1t = params["w1"].T.astype(mm_dtype)                                 # (H1, D)
    b1c = params["b1"].T                                                  # (H1, 1) f32
    w2t = w2f.T.astype(mm_dtype)                                          # (H2, H1)
    b2c = b2f.T                                                           # (H2, 1) f32
    w3c = w3f.astype(jnp.float32)                                         # (H2, 1) f32 (VPU path)

    T = batch_tile
    B_pad = pl.cdiv(B, T) * T
    xt = x.T.astype(mm_dtype)                                             # (D, B)
    xt = jnp.pad(xt, ((0, 0), (0, B_pad - B)))                            # (D, B_pad)

    full = lambda shape: pl.BlockSpec(shape, lambda i: (0, 0))            # grid-invariant operands
    in_specs = [
        pl.BlockSpec((D, T), lambda i: (0, i)),                           # xt, tiled over batch (lanes)
        full((H1, D)), full((H1, 1)),
        full((H2, H1)), full((H2, 1)),
        full((H2, 1)),
        pl.BlockSpec(memory_space=pltpu.MemorySpace.SMEM),                # b3 scalar in SMEM
    ]
    out_spec = pl.BlockSpec((1, T), lambda i: (0, i))                     # lane-dense output row

    out_t = pl.pallas_call(
        mlp_kernel,
        out_shape=jax.ShapeDtypeStruct((1, B_pad), jnp.float32),
        grid_spec=pltpu.PrefetchScalarGridSpec(
            num_scalar_prefetch=0,
            grid=(B_pad // T,),
            in_specs=in_specs,
            out_specs=out_spec,
        ),
        compiler_params=pltpu.CompilerParams(
            dimension_semantics=("parallel",)),
    )(xt, w1t, b1c, w2t, b2c, w3c, b3f)

    return out_t[0, :B].reshape(B, 1)


def make_params(key, input_dim, hidden_dim1=128, hidden_dim2=64):
    ks = jax.random.split(key, 16)

    def linear_init(kw, kb, fan_in, fan_out):
        bound = 1.0 / jnp.sqrt(jnp.float32(fan_in))
        w = jax.random.uniform(kw, (fan_in, fan_out), jnp.float32, -bound, bound)
        b = jax.random.uniform(kb, (1, fan_out), jnp.float32, -bound, bound)
        return w, b

    w1, b1 = linear_init(ks[0], ks[1], input_dim, hidden_dim1)
    w2, b2 = linear_init(ks[2], ks[3], hidden_dim1, hidden_dim2)
    w3, b3 = linear_init(ks[4], ks[5], hidden_dim2, 1)

    # BatchNorm1d affine params / running stats (non-trivial values to exercise the math).
    g1 = 1.0 + 0.1 * jax.random.normal(ks[6], (1, hidden_dim1), jnp.float32)
    be1 = 0.1 * jax.random.normal(ks[7], (1, hidden_dim1), jnp.float32)
    m1 = 0.1 * jax.random.normal(ks[8], (1, hidden_dim1), jnp.float32)
    v1 = jax.random.uniform(ks[9], (1, hidden_dim1), jnp.float32, 0.5, 1.5)

    g2 = 1.0 + 0.1 * jax.random.normal(ks[10], (1, hidden_dim2), jnp.float32)
    be2 = 0.1 * jax.random.normal(ks[11], (1, hidden_dim2), jnp.float32)
    m2 = 0.1 * jax.random.normal(ks[12], (1, hidden_dim2), jnp.float32)
    v2 = jax.random.uniform(ks[13], (1, hidden_dim2), jnp.float32, 0.5, 1.5)

    return dict(w1=w1, b1=b1, g1=g1, be1=be1, m1=m1, v1=v1,
                w2=w2, b2=b2, g2=g2, be2=be2, m2=m2, v2=v2,
                w3=w3, b3=b3)


def mlp_reference(x, p):
    # Un-folded eval-mode reference (matches the PyTorch module in .eval()).
    h1 = jnp.maximum(x @ p["w1"] + p["b1"], 0.0)
    h1 = (h1 - p["m1"]) * jax.lax.rsqrt(p["v1"] + BN_EPS) * p["g1"] + p["be1"]
    h2 = jnp.maximum(h1 @ p["w2"] + p["b2"], 0.0)
    h2 = (h2 - p["m2"]) * jax.lax.rsqrt(p["v2"] + BN_EPS) * p["g2"] + p["be2"]
    return h2 @ p["w3"] + p["b3"]


if __name__ == "__main__":
    key = jax.random.PRNGKey(0)
    k_x, k_p, k_x2 = jax.random.split(key, 3)

    batch, input_dim = 16, 32
    x = jax.random.normal(k_x, (batch, input_dim), jnp.float32)
    params = make_params(k_p, input_dim)

    # f32 path (default): batch < tile exercises the padding/slice path.
    out = mlp_forward(x, params)                      # batch_tile=256 default
    out = jax.block_until_ready(out)
    ref = mlp_reference(x, params)
    assert out.shape == (batch, 1)
    assert jnp.allclose(out, ref, atol=1e-4, rtol=1e-4), "f32 kernel mismatch vs reference"

    # bf16 matmul-operand path (v6e/v7x recommendation), multi-step grid.
    batch2 = 384
    x2 = jax.random.normal(k_x2, (batch2, input_dim), jnp.float32)
    out2 = mlp_forward(x2, params, batch_tile=128, use_bf16=True)
    out2 = jax.block_until_ready(out2)
    ref2 = mlp_reference(x2, params)
    assert out2.shape == (batch2, 1)
    assert jnp.allclose(out2, ref2, atol=1e-1, rtol=1e-1), "bf16 kernel mismatch vs reference"

    print("KERNEL_OK")
</pallas_src>

<mosaic_0001>
module attributes {stable_mosaic.version = 11 : i64} {
  func.func @mlp_kernel(%arg0: i32, %arg1: memref<32x256xf32, #tpu.memory_space<vmem>>, %arg2: memref<128x32xf32, #tpu.memory_space<vmem>>, %arg3: memref<128x1xf32, #tpu.memory_space<vmem>>, %arg4: memref<64x128xf32, #tpu.memory_space<vmem>>, %arg5: memref<64x1xf32, #tpu.memory_space<vmem>>, %arg6: memref<64x1xf32, #tpu.memory_space<vmem>>, %arg7: memref<1xf32, #tpu.memory_space<smem>>, %arg8: memref<1x256xf32, #tpu.memory_space<vmem>>) attributes {dimension_semantics = [#tpu.dimension_semantics<parallel>], iteration_bounds = array<i64: 1>, scalar_prefetch = 0 : i64, scratch_operands = 0 : i64, tpu.core_type = #tpu.core_type<tc>, window_params = [{transform_indices = @transform_0, window_bounds = array<i64: 32, 256>}, {pipeline_mode = #tpu.pipeline_mode<synchronous>, transform_indices = @transform_1, window_bounds = array<i64: 128, 32>}, {pipeline_mode = #tpu.pipeline_mode<synchronous>, transform_indices = @transform_2, window_bounds = array<i64: 128, 1>}, {pipeline_mode = #tpu.pipeline_mode<synchronous>, transform_indices = @transform_3, window_bounds = array<i64: 64, 128>}, {pipeline_mode = #tpu.pipeline_mode<synchronous>, transform_indices = @transform_4, window_bounds = array<i64: 64, 1>}, {pipeline_mode = #tpu.pipeline_mode<synchronous>, transform_indices = @transform_5, window_bounds = array<i64: 64, 1>}, {transform_indices = @transform_6, window_bounds = array<i64: 1>}, {transform_indices = @transform_7, window_bounds = array<i64: 1, 256>}]} {
    %c0 = arith.constant 0 : index
    %c0_0 = arith.constant 0 : index
    %0 = vector.load %arg1[%c0, %c0_0] : memref<32x256xf32, #tpu.memory_space<vmem>>, vector<32x256xf32>
    %c0_1 = arith.constant 0 : index
    %c0_2 = arith.constant 0 : index
    %1 = vector.load %arg2[%c0_1, %c0_2] : memref<128x32xf32, #tpu.memory_space<vmem>>, vector<128x32xf32>
    %cst = arith.constant dense<0.000000e+00> : vector<128x256xf32>
    %2 = tpu.matmul %1, %0, %cst {dimension_numbers = #tpu.dot_dimension_numbers<[1], [0], [0], [1], [0, 0, 1, 1], [], []>} : vector<128x32xf32>, vector<32x256xf32>, vector<128x256xf32> -> vector<128x256xf32>
    %c0_3 = arith.constant 0 : index
    %c0_4 = arith.constant 0 : index
    %3 = vector.load %arg3[%c0_3, %c0_4] : memref<128x1xf32, #tpu.memory_space<vmem>>, vector<128x1xf32>
    %4 = vector.broadcast %3 : vector<128x1xf32> to vector<128x256xf32>
    %5 = arith.addf %2, %4 : vector<128x256xf32>
    %cst_5 = arith.constant 0.000000e+00 : f32
    %6 = vector.broadcast %cst_5 : f32 to vector<128x256xf32>
    %7 = arith.maximumf %5, %6 : vector<128x256xf32>
    %c0_6 = arith.constant 0 : index
    %c0_7 = arith.constant 0 : index
    %8 = vector.load %arg4[%c0_6, %c0_7] : memref<64x128xf32, #tpu.memory_space<vmem>>, vector<64x128xf32>
    %cst_8 = arith.constant dense<0.000000e+00> : vector<64x256xf32>
    %9 = tpu.matmul %8, %7, %cst_8 {dimension_numbers = #tpu.dot_dimension_numbers<[1], [0], [0], [1], [0, 0, 1, 1], [], []>} : vector<64x128xf32>, vector<128x256xf32>, vector<64x256xf32> -> vector<64x256xf32>
    %c0_9 = arith.constant 0 : index
    %c0_10 = arith.constant 0 : index
    %10 = vector.load %arg5[%c0_9, %c0_10] : memref<64x1xf32, #tpu.memory_space<vmem>>, vector<64x1xf32>
    %11 = vector.broadcast %10 : vector<64x1xf32> to vector<64x256xf32>
    %12 = arith.addf %9, %11 : vector<64x256xf32>
    %cst_11 = arith.constant 0.000000e+00 : f32
    %13 = vector.broadcast %cst_11 : f32 to vector<64x256xf32>
    %14 = arith.maximumf %12, %13 : vector<64x256xf32>
    %c0_12 = arith.constant 0 : index
    %c0_13 = arith.constant 0 : index
    %15 = vector.load %arg6[%c0_12, %c0_13] : memref<64x1xf32, #tpu.memory_space<vmem>>, vector<64x1xf32>
    %16 = vector.broadcast %15 : vector<64x1xf32> to vector<64x256xf32>
    %17 = arith.mulf %14, %16 : vector<64x256xf32>
    %cst_14 = arith.constant dense<0.000000e+00> : vector<256xf32>
    %18 = vector.multi_reduction <add>, %17, %cst_14 [0] : vector<64x256xf32> to vector<256xf32>
    %19 = vector.shape_cast %18 : vector<256xf32> to vector<1x256xf32>
    %c0_15 = arith.constant 0 : index
    %20 = memref.load %arg7[%c0_15] : memref<1xf32, #tpu.memory_space<smem>>
    %21 = vector.broadcast %20 : f32 to vector<1x256xf32>
    %22 = arith.addf %19, %21 : vector<1x256xf32>
    %c0_16 = arith.constant 0 : index
    %c0_17 = arith.constant 0 : index
    %23 = vector.load %arg8[%c0_16, %c0_17] : memref<1x256xf32, #tpu.memory_space<vmem>>, vector<1x256xf32>
    tpu.vector_store %arg8[%c0_16, %c0_17], %22 {strides = array<i32>} : memref<1x256xf32, #tpu.memory_space<vmem>>, vector<1x256xf32>,
    return
  }
  func.func @transform_0(%arg0: i32) -> (i32, i32) {
    %c0_i32 = arith.constant 0 : i32
    %c0_i32_0 = arith.constant 0 : i32
    return %c0_i32, %arg0 : i32, i32
  }
  func.func @transform_1(%arg0: i32) -> (i32, i32) {
    %c0_i32 = arith.constant 0 : i32
    %c0_i32_0 = arith.constant 0 : i32
    %c0_i32_1 = arith.constant 0 : i32
    return %c0_i32, %c0_i32_0 : i32, i32
  }
  func.func @transform_2(%arg0: i32) -> (i32, i32) {
    %c0_i32 = arith.constant 0 : i32
    %c0_i32_0 = arith.constant 0 : i32
    %c0_i32_1 = arith.constant 0 : i32
    return %c0_i32, %c0_i32_0 : i32, i32
  }
  func.func @transform_3(%arg0: i32) -> (i32, i32) {
    %c0_i32 = arith.constant 0 : i32
    %c0_i32_0 = arith.constant 0 : i32
    %c0_i32_1 = arith.constant 0 : i32
    return %c0_i32, %c0_i32_0 : i32, i32
  }
  func.func @transform_4(%arg0: i32) -> (i32, i32) {
    %c0_i32 = arith.constant 0 : i32
    %c0_i32_0 = arith.constant 0 : i32
    %c0_i32_1 = arith.constant 0 : i32
    return %c0_i32, %c0_i32_0 : i32, i32
  }
  func.func @transform_5(%arg0: i32) -> (i32, i32) {
    %c0_i32 = arith.constant 0 : i32
    %c0_i32_0 = arith.constant 0 : i32
    %c0_i32_1 = arith.constant 0 : i32
    return %c0_i32, %c0_i32_0 : i32, i32
  }
  func.func @transform_6(%arg0: i32) -> i32 {
    %c0_i32 = arith.constant 0 : i32
    %c0_i32_0 = arith.constant 0 : i32
    return %c0_i32 : i32
  }
  func.func @transform_7(%arg0: i32) -> (i32, i32) {
    %c0_i32 = arith.constant 0 : i32
    %c0_i32_0 = arith.constant 0 : i32
    return %c0_i32, %arg0 : i32, i32
  }
}

</mosaic_0001>

<bundles_post_ra>
// kernel: mlp_forward.1
= control target key start
LH: loop header
LB: loop body
LE: loop exit
PB: predicated region body
PF: predicated region fallthrough
CT: control target
= control target key end

     0   :  { %v716_v3 = vmov 0.0   ;;  %v717_v4 = vmov 0   ;;  %vm147_vm0 = vcmask 261120   ;;  %s1045_s0 = inlined_call_operand.vmem [shape: f32[32,256], index: 0, kind: input, shape index: {}]   ;;  %s1046_s1 = inlined_call_operand.vmem [shape: f32[128,32], index: 1, kind: input, shape index: {}]   ;;  %s1047_s2 = inlined_call_operand.vmem [shape: f32[128,1], index: 2, kind: input, shape index: {}]   ;;  %s1048_s4 = inlined_call_operand.vmem [shape: f32[64,1], index: 4, kind: input, shape index: {}]   ;;  %s1049_s5 = inlined_call_operand.vmem [shape: f32[64,1], index: 5, kind: input, shape index: {}]   ;;  %s1050_s3 = inlined_call_operand.vmem [shape: f32[64,128], index: 3, kind: input, shape index: {}]   ;;  %s1051_s6 = inlined_call_operand.<no memory space> [shape: f32[1], index: 6, kind: input, shape index: {}]   ;;  %s1052_s7 = inlined_call_operand.vmem [shape: f32[1,256], index: 7, kind: output, shape index: {}]  }
   0x1   :  { %v34_v0 = vld [vmem:[%s1045_s0 + $0x38] sm:$0xff]  ;;  %v33_v1 = vld [vmem:[%s1045_s0 + $0x30] sm:$0xff]  ;;  %v32_v2 = vld [vmem:[%s1045_s0 + $0x28] sm:$0xff]  ;;  %260 = vmatprep.mubr.f32.mxu0 %v716_v3  ;;  %715 = vset.pattern.permute.xlu1 %v717_v4 }
   0x2   :  { %220 = vmatprep.subr.mxu0 %v34_v0  ;;  %v31_v5 = vld [vmem:[%s1045_s0 + $0x20] sm:$0xff]  ;;  %714 = vset.pattern.permute.xlu0 %v717_v4  ;;  %v30_v6 = vld [vmem:[%s1045_s0 + $0x18] sm:$0xff]  ;;  %v29_v7 = vld [vmem:[%s1045_s0 + $0x10] sm:$0xff] }
   0x3   :  { %221 = vmatpush1.msra.mxu0 %v33_v1  ;;  %509 = vmatprep.mubr.f32.mxu1 %v716_v3  ;;  %v28_v8 = vld [vmem:[%s1045_s0 + $0x8] sm:$0xff]  ;;  %v27_v9 = vld [vmem:[%s1045_s0] sm:$0xff]  ;;  %v66_v12 = vld [vmem:[%s1047_s2 + $0x78] sm:$0xff] }
   0x4   :  { %222 = vmatprep.subr.mxu0 %v32_v2  ;;  %v35_v10 = vld [vmem:[%s1046_s1] sm:$0xff]  ;;  %v64_v11 = vld [vmem:[%s1047_s2 + $0x68] sm:$0xff]  ;;  %144 = vperm.xlu0 %714, %v66_v12   ;;  %v65_v14 = vld [vmem:[%s1047_s2 + $0x70] sm:$0xff] }
   0x5   :  { %223 = vmatpush1.msra.mxu0 %v31_v5  ;;  %134 = vperm.xlu1 %715, %v64_v11   ;;  %v63_v13 = vld [vmem:[%s1047_s2 + $0x60] sm:$0xff]  ;;  %v36_v15 = vld [vmem:[%s1046_s1 + $0x8] sm:$0xff]  ;;  %v61_v16 = vld [vmem:[%s1047_s2 + $0x50] sm:$0xff] }
   0x6   :  { %224 = vmatprep.subr.mxu0 %v30_v6  ;;  %v62_v17 = vld [vmem:[%s1047_s2 + $0x58] sm:$0xff]  ;;  %v37_v18 = vld [vmem:[%s1046_s1 + $0x10] sm:$0xff]  ;;  %v59_v19 = vld [vmem:[%s1047_s2 + $0x40] sm:$0xff] }
   0x7   :  { %225 = vmatpush1.msra.mxu0 %v29_v7  ;;  %v60_v20 = vld [vmem:[%s1047_s2 + $0x48] sm:$0xff]  ;;  %v38_v21 = vld [vmem:[%s1046_s1 + $0x18] sm:$0xff]  ;;  %v57_v22 = vld [vmem:[%s1047_s2 + $0x30] sm:$0xff] }
   0x8   :  { %226 = vmatprep.subr.mxu0 %v28_v8  ;;  %139 = vperm.xlu0 %714, %v65_v14   ;;  %v58_v23 = vld [vmem:[%s1047_s2 + $0x38] sm:$0xff]  ;;  %v39_v24 = vld [vmem:[%s1046_s1 + $0x20] sm:$0xff]  ;;  %v56_v26 = vld [vmem:[%s1047_s2 + $0x28] sm:$0xff] }
   0x9   :  { %227 = vmatpush1.msra.mxu0 %v27_v9  ;;  %129 = vperm.xlu1 %715, %v63_v13   ;;  %v55_v25 = vld [vmem:[%s1047_s2 + $0x20] sm:$0xff]  ;;  %v40_v27 = vld [vmem:[%s1046_s1 + $0x28] sm:$0xff]  ;;  %v53_v28 = vld [vmem:[%s1047_s2 + $0x10] sm:$0xff] }
   0xa   :  { %695 = vmatmul.mubr.msk.f32.vlgmr.msra.gmra.mxu0 %vm147_vm0, %v35_v10  ;;  %v54_v29 = vld [vmem:[%s1047_s2 + $0x18] sm:$0xff]  ;;  %v41_v30 = vld [vmem:[%s1046_s1 + $0x30] sm:$0xff]  ;;  %v51_v31 = vld [vmem:[%s1047_s2] sm:$0xff] }
   0xb   :  { %266 = vmatprep.mubr.f32.mxu0 %v716_v3  ;;  %v52_v32 = vld [vmem:[%s1047_s2 + $0x8] sm:$0xff]  ;;  %v42_v33 = vld [vmem:[%s1046_s1 + $0x38] sm:$0xff]  ;;  %v397_v35 = vld [vmem:[%s1048_s4] sm:$0xff] }
   0xc   :  { %124 = vperm.xlu0 %714, %v62_v17   ;;  %v398_v34 = vld [vmem:[%s1048_s4 + $0x8] sm:$0xff]  ;;  %v43_v36 = vld [vmem:[%s1046_s1 + $0x40] sm:$0xff]  ;;  %v400_v37 = vld [vmem:[%s1048_s4 + $0x18] sm:$0xff] }
   0xd   :  { %119 = vperm.xlu1 %715, %v61_v16   ;;  %v399_v38 = vld [vmem:[%s1048_s4 + $0x10] sm:$0xff]  ;;  %v44_v39 = vld [vmem:[%s1046_s1 + $0x48] sm:$0xff]  ;;  %v574_v41 = vld [vmem:[%s1049_s5] sm:$0xff] }
   0xe   :  { %696 = vmatmul.mubr.msk.f32.gmra.mxu0 %vm147_vm0, %v36_v15  ;;  %v575_v40 = vld [vmem:[%s1049_s5 + $0x8] sm:$0xff]  ;;  %v45_v42 = vld [vmem:[%s1046_s1 + $0x50] sm:$0xff]  ;;  %v401_v44 = vld [vmem:[%s1048_s4 + $0x20] sm:$0xff] }
   0xf   :  { %272 = vmatprep.mubr.f32.mxu0 %v716_v3  ;;  %v576_v43 = vld [vmem:[%s1049_s5 + $0x10] sm:$0xff]  ;;  %v46_v45 = vld [vmem:[%s1046_s1 + $0x58] sm:$0xff]  ;;  %v402_v47 = vld [vmem:[%s1048_s4 + $0x28] sm:$0xff] }
  0x10   :  { %114 = vperm.xlu0 %714, %v60_v20   ;;  %v577_v46 = vld [vmem:[%s1049_s5 + $0x18] sm:$0xff]  ;;  %v47_v48 = vld [vmem:[%s1046_s1 + $0x60] sm:$0xff]  ;;  %v403_v50 = vld [vmem:[%s1048_s4 + $0x30] sm:$0xff] }
  0x11   :  { %109 = vperm.xlu1 %715, %v59_v19   ;;  %v578_v49 = vld [vmem:[%s1049_s5 + $0x20] sm:$0xff]  ;;  %v48_v51 = vld [vmem:[%s1046_s1 + $0x68] sm:$0xff]  ;;  %v404_v53 = vld [vmem:[%s1048_s4 + $0x38] sm:$0xff] }
  0x12   :  { %697 = vmatmul.mubr.msk.f32.gmra.mxu0 %vm147_vm0, %v37_v18  ;;  %v579_v52 = vld [vmem:[%s1049_s5 + $0x28] sm:$0xff]  ;;  %v49_v54 = vld [vmem:[%s1046_s1 + $0x70] sm:$0xff]  ;;  %v581_v55 = vld [vmem:[%s1049_s5 + $0x38] sm:$0xff] }
  0x13   :  { %278 = vmatprep.mubr.f32.mxu0 %v716_v3  ;;  %v580_v56 = vld [vmem:[%s1049_s5 + $0x30] sm:$0xff]  ;;  %v50_v57 = vld [vmem:[%s1046_s1 + $0x78] sm:$0xff] }
  0x14   :  { %104 = vperm.xlu0 %714, %v58_v23  }
  0x15   :  { %99 = vperm.xlu1 %715, %v57_v22  }
  0x16   :  { %698 = vmatmul.mubr.msk.f32.gmra.mxu0 %vm147_vm0, %v38_v21 }
  0x17   :  { %284 = vmatprep.mubr.f32.mxu0 %v716_v3 }
  0x18   :  { %94 = vperm.xlu0 %714, %v56_v26  }
  0x19   :  { %89 = vperm.xlu1 %715, %v55_v25  }
  0x1a   :  { %699 = vmatmul.mubr.msk.f32.gmra.mxu0 %vm147_vm0, %v39_v24 }
  0x1b   :  { %290 = vmatprep.mubr.f32.mxu0 %v716_v3 }
  0x1c   :  { %84 = vperm.xlu0 %714, %v54_v29  }
  0x1d   :  { %79 = vperm.xlu1 %715, %v53_v28  }
  0x1e   :  { %700 = vmatmul.mubr.msk.f32.gmra.mxu0 %vm147_vm0, %v40_v27 }
  0x1f   :  { %296 = vmatprep.mubr.f32.mxu0 %v716_v3 }
  0x20   :  { %74 = vperm.xlu0 %714, %v52_v32  }
  0x21   :  { %69 = vperm.xlu1 %715, %v51_v31  }
  0x22   :  { %701 = vmatmul.mubr.msk.f32.gmra.mxu0 %vm147_vm0, %v41_v30 }
  0x23   :  { %302 = vmatprep.mubr.f32.mxu0 %v716_v3 }
  0x24   :  { %407 = vperm.xlu0 %714, %v397_v35  }
  0x25   :  { %412 = vperm.xlu1 %715, %v398_v34  }
  0x26   :  { %702 = vmatmul.mubr.msk.f32.gmra.mxu0 %vm147_vm0, %v42_v33 }
  0x27   :  { %308 = vmatprep.mubr.f32.mxu0 %v716_v3 }
  0x28   :  { %417 = vperm.xlu0 %714, %v399_v38  }
  0x29   :  { %422 = vperm.xlu1 %715, %v400_v37  }
  0x2a   :  { %703 = vmatmul.mubr.msk.f32.gmra.mxu0 %vm147_vm0, %v43_v36 }
  0x2b   :  { %314 = vmatprep.mubr.f32.mxu0 %v716_v3 }
  0x2c   :  { %584 = vperm.xlu0 %714, %v574_v41  }
  0x2d   :  { %589 = vperm.xlu1 %715, %v575_v40  }
  0x2e   :  { %704 = vmatmul.mubr.msk.f32.gmra.mxu0 %vm147_vm0, %v44_v39 }
  0x2f   :  { %320 = vmatprep.mubr.f32.mxu0 %v716_v3 }
  0x30   :  { %427 = vperm.xlu0 %714, %v401_v44  }
  0x31   :  { %594 = vperm.xlu1 %715, %v576_v43  }
  0x32   :  { %705 = vmatmul.mubr.msk.f32.gmra.mxu0 %vm147_vm0, %v45_v42 }
  0x33   :  { %326 = vmatprep.mubr.f32.mxu0 %v716_v3 }
  0x34   :  { %432 = vperm.xlu0 %714, %v402_v47  }
  0x35   :  { %599 = vperm.xlu1 %715, %v577_v46  }
  0x36   :  { %706 = vmatmul.mubr.msk.f32.gmra.mxu0 %vm147_vm0, %v46_v45 }
  0x37   :  { %332 = vmatprep.mubr.f32.mxu0 %v716_v3 }
  0x38   :  { %437 = vperm.xlu0 %714, %v403_v50  }
  0x39   :  { %604 = vperm.xlu1 %715, %v578_v49  }
  0x3a   :  { %707 = vmatmul.mubr.msk.f32.gmra.mxu0 %vm147_vm0, %v47_v48 }
  0x3b   :  { %338 = vmatprep.mubr.f32.mxu0 %v716_v3 }
  0x3c   :  { %442 = vperm.xlu0 %714, %v404_v53  }
  0x3d   :  { %609 = vperm.xlu1 %715, %v579_v52  }
  0x3e   :  { %708 = vmatmul.mubr.msk.f32.gmra.mxu0 %vm147_vm0, %v48_v51 }
  0x3f   :  { %344 = vmatprep.mubr.f32.mxu0 %v716_v3 }
  0x40   :  { %614 = vperm.xlu0 %714, %v580_v56  }
  0x41   :  { %619 = vperm.xlu1 %715, %v581_v55  }
  0x42   :  { %709 = vmatmul.mubr.msk.f32.gmra.mxu0 %vm147_vm0, %v49_v54 }
  0x43   :  { %350 = vmatprep.mubr.f32.mxu0 %v716_v3 }
  0x46   :  { %710 = vmatmul.mubr.msk.f32.gmra.mxu0 %vm147_vm0, %v50_v57 }
  0x7f   :  { %v145_v18 = vpop.permute.xlu0 %144 }
  0x80   :  { %v135_v20 = vpop.permute.xlu1 %134 }
  0x83   :  { %v140_v23 = vpop.permute.xlu0 %139 }
  0x84   :  { %v130_v25 = vpop.permute.xlu1 %129 }
  0x87   :  { %v125_v28 = vpop.permute.xlu0 %124 }
  0x88   :  { %v120_v30 = vpop.permute.xlu1 %119 }
  0x8b   :  { %v115_v34 = vpop.permute.xlu0 %114 }
  0x8c   :  { %v110_v38 = vpop.permute.xlu1 %109 }
  0x8f   :  { %v105_v47 = vpop.permute.xlu0 %104 }
  0x90   :  { %v100_v52 = vpop.permute.xlu1 %99 }
  0xca   :  { %v960_v58 = vpop.f32.mrf.mxu0 }
  0xcc   :  { %v962_v59 = vpop.f32.mrf.mxu0 }
  0xce   :  { %v964_v60 = vpop.f32.mrf.mxu0 }
  0xd0   :  { %v966_v61 = vpop.f32.mrf.mxu0 }
  0xd2   :  { %v968_v62 = vpop.f32.mrf.mxu0 }
  0xd4   :  { %v970_v63 = vpop.f32.mrf.mxu0 }
  0xd6   :  { %v972_v0 = vpop.f32.mrf.mxu0 }
  0xd8   :  { %v974_v1 = vpop.f32.mrf.mxu0 }
  0xda   :  { %v976_v2 = vpop.f32.mrf.mxu0 }
  0xdc   :  { %v978_v4 = vpop.f32.mrf.mxu0 }
  0xde   :  { %v980_v5 = vpop.f32.mrf.mxu0 }
  0xe0   :  { %v982_v6 = vpop.f32.mrf.mxu0 }
  0xe2   :  { %v984_v7 = vpop.f32.mrf.mxu0 }
  0xe4   :  { %v986_v8 = vpop.f32.mrf.mxu0 }
  0xe6   :  { %v988_v9 = vpop.f32.mrf.mxu0 }
  0xe8   :  { %v990_v10 = vpop.f32.mrf.mxu0 }
  0xea   :  { %v310_v11 = vpop.f32.mrf.mxu0 }
  0xec   :  { %v312_v12 = vpop.f32.mrf.mxu0 }
  0xee   :  { %v316_v13 = vpop.f32.mrf.mxu0 }
  0xf0   :  { %v318_v14 = vpop.f32.mrf.mxu0 }
  0xf1   :  { %v319_v57 = vadd.f32 %v318_v14, %v115_v34 }
  0xf2   :  { %v322_v15 = vpop.f32.mrf.mxu0 }
  0xf3   :  { %v323_v55 = vadd.f32 %v322_v15, %v120_v30  ;;  %v305_v15 = vadd.f32 %v988_v9, %v105_v47 }
  0xf4   :  { %v324_v16 = vpop.f32.mrf.mxu0 }
  0xf5   :  { %v325_v53 = vadd.f32 %v324_v16, %v120_v30  ;;  %v307_v16 = vadd.f32 %v990_v10, %v105_v47  ;;  %v392_v47 = vld [vmem:[%s1050_s3 + $0x18] sm:$0xff] }
  0xf6   :  { %v328_v17 = vpop.f32.mrf.mxu0 }
  0xf7   :  { %v329_v50 = vadd.f32 %v328_v17, %v125_v28  ;;  %v311_v17 = vadd.f32 %v310_v11, %v110_v38  ;;  %v372_v30 = vmax.f32 %v307_v16, 0.0 }
  0xf8   :  { %v330_v19 = vpop.f32.mrf.mxu0 }
  0xf9   :  { %v331_v48 = vadd.f32 %v330_v19, %v125_v28  ;;  %v313_v19 = vadd.f32 %v312_v12, %v110_v38  ;;  %v299_v12 = vadd.f32 %v984_v7, %v100_v52  ;;  %v373_v28 = vmax.f32 %v311_v17, 0.0 }
  0xfa   :  { %v334_v21 = vpop.f32.mrf.mxu0 }
  0xfb   :  { %v335_v45 = vadd.f32 %v334_v21, %v130_v25  ;;  %v379_v21 = vmax.f32 %v329_v50, 0.0  ;;  %v395_v50 = vld [vmem:[%s1050_s3 + $0x30] sm:$0xff] }
  0xfc   :  { %v336_v22 = vpop.f32.mrf.mxu0 }
  0xfd   :  { %v337_v43 = vadd.f32 %v336_v22, %v130_v25  ;;  %v381_v56 = vmax.f32 %v335_v45, 0.0  ;;  %v95_v22 = vpop.permute.xlu0 %94  ;;  %v90_v25 = vpop.permute.xlu1 %89 }
  0xfe   :  { %v340_v24 = vpop.f32.mrf.mxu0  ;;  %v293_v10 = vadd.f32 %v980_v5, %v95_v22 }
  0xff   :  { %v341_v41 = vadd.f32 %v340_v24, %v135_v20  ;;  %v382_v54 = vmax.f32 %v337_v43, 0.0  ;;  %v377_v24 = vmax.f32 %v323_v55, 0.0 }
 0x100   :  { %v342_v26 = vpop.f32.mrf.mxu0 }
 0x101   :  { %v343_v39 = vadd.f32 %v342_v26, %v135_v20  ;;  %v383_v51 = vmax.f32 %v341_v41, 0.0  ;;  %v317_v20 = vadd.f32 %v316_v13, %v115_v34  ;;  %v376_v26 = vmax.f32 %v319_v57, 0.0  ;;  %v85_v11 = vpop.permute.xlu0 %84  ;;  %v80_v9 = vpop.permute.xlu1 %79 }
 0x102   :  { %v346_v27 = vpop.f32.mrf.mxu0  ;;  %v301_v13 = vadd.f32 %v986_v8, %v100_v52  ;;  %v287_v8 = vadd.f32 %v976_v2, %v90_v25  ;;  %v369_v34 = vmax.f32 %v299_v12, 0.0  ;;  %v283_v7 = vadd.f32 %v974_v1, %v85_v11 }
 0x103   :  { %v347_v37 = vadd.f32 %v346_v27, %v140_v23  ;;  %v384_v49 = vmax.f32 %v343_v39, 0.0  ;;  %v375_v14 = vmax.f32 %v317_v20, 0.0  ;;  %v374_v27 = vmax.f32 %v313_v19, 0.0 }
 0x104   :  { %v348_v29 = vpop.f32.mrf.mxu0  ;;  %v365_v39 = vmax.f32 %v287_v8, 0.0  ;;  %v364_v41 = vmax.f32 %v283_v7, 0.0 }
 0x105   :  { %v349_v35 = vadd.f32 %v348_v29, %v140_v23  ;;  %v385_v46 = vmax.f32 %v347_v37, 0.0  ;;  %v378_v23 = vmax.f32 %v325_v53, 0.0  ;;  %v295_v29 = vadd.f32 %v982_v6, %v95_v22  ;;  %v75_v5 = vpop.permute.xlu0 %74  ;;  %v70_v2 = vpop.permute.xlu1 %69 }
 0x106   :  { %v352_v31 = vpop.f32.mrf.mxu0  ;;  %v281_v6 = vadd.f32 %v972_v0, %v85_v11  ;;  %v277_v37 = vadd.f32 %v970_v63, %v80_v9  ;;  %v269_v1 = vadd.f32 %v964_v60, %v75_v5  ;;  %v265_v0 = vadd.f32 %v962_v59, %v70_v2  ;;  %v389_v60 = vld [vmem:[%s1050_s3] sm:$0xff]  ;;  %v391_v59 = vld [vmem:[%s1050_s3 + $0x10] sm:$0xff] }
 0x107   :  { %v353_v32 = vadd.f32 %v352_v31, %v145_v18  ;;  %v386_v44 = vmax.f32 %v349_v35, 0.0  ;;  %v371_v31 = vmax.f32 %v305_v15, 0.0  ;;  %v368_v35 = vmax.f32 %v295_v29, 0.0 }
 0x108   :  { %v354_v33 = vpop.f32.mrf.mxu0  ;;  %v362_v43 = vmax.f32 %v277_v37, 0.0  ;;  %v263_v63 = vadd.f32 %v960_v58, %v70_v2  ;;  %v359_v45 = vmax.f32 %v269_v1, 0.0  ;;  %v390_v58 = vld [vmem:[%s1050_s3 + $0x8] sm:$0xff] }
 0x109   :  { %v355_v36 = vadd.f32 %v354_v33, %v145_v18  ;;  %v387_v42 = vmax.f32 %v353_v32, 0.0  ;;  %v380_v18 = vmax.f32 %v331_v48, 0.0  ;;  %v289_v32 = vadd.f32 %v978_v4, %v90_v25  ;;  %v393_v48 = vld [vmem:[%s1050_s3 + $0x20] sm:$0xff]  ;;  %v408_v52 = vpop.permute.xlu0 %407  ;;  %v413_v53 = vpop.permute.xlu1 %412 }
 0x10a   :  { %v370_v33 = vmax.f32 %v301_v13, 0.0  ;;  %v275_v4 = vadd.f32 %v968_v62, %v80_v9 }
 0x10b   :  { %v388_v40 = vmax.f32 %v355_v36, 0.0  ;;  %v367_v36 = vmax.f32 %v293_v10, 0.0  ;;  %v366_v38 = vmax.f32 %v289_v32, 0.0 }
 0x10d   :  { %445 = vmatprep.subr.mxu1 %v388_v40  ;;  %v271_v40 = vadd.f32 %v966_v61, %v75_v5  ;;  %v357_v61 = vmax.f32 %v263_v63, 0.0  ;;  %v423_v55 = vpop.permute.xlu1 %422 }
 0x10e   :  { %446 = vmatpush1.msra.mxu1 %v387_v42  ;;  %v363_v42 = vmax.f32 %v281_v6, 0.0 }
 0x10f   :  { %447 = vmatprep.subr.mxu1 %v386_v44  ;;  %v361_v44 = vmax.f32 %v275_v4, 0.0  ;;  %v360_v62 = vmax.f32 %v271_v40, 0.0 }
 0x110   :  { %448 = vmatpush1.msra.mxu1 %v385_v46  ;;  %v358_v46 = vmax.f32 %v265_v0, 0.0 }
 0x111   :  { %449 = vmatprep.subr.mxu1 %v384_v49  ;;  %v394_v49 = vld [vmem:[%s1050_s3 + $0x28] sm:$0xff] }
 0x112   :  { %450 = vmatpush1.msra.mxu1 %v383_v51  ;;  %v396_v51 = vld [vmem:[%s1050_s3 + $0x38] sm:$0xff] }
 0x113   :  { %451 = vmatprep.subr.mxu1 %v382_v54  ;;  %v418_v54 = vpop.permute.xlu0 %417 }
 0x114   :  { %452 = vmatpush1.msra.mxu1 %v381_v56 }
 0x115   :  { %453 = vmatprep.subr.mxu1 %v380_v18  ;;  %v590_v18 = vpop.permute.xlu1 %589 }
 0x116   :  { %454 = vmatpush1.msra.mxu1 %v379_v21 }
 0x117   :  { %455 = vmatprep.subr.mxu1 %v378_v23  ;;  %v585_v56 = vpop.permute.xlu0 %584 }
 0x118   :  { %456 = vmatpush1.msra.mxu1 %v377_v24 }
 0x119   :  { %457 = vmatprep.subr.mxu1 %v376_v26  ;;  %v595_v23 = vpop.permute.xlu1 %594 }
 0x11a   :  { %458 = vmatpush1.msra.mxu1 %v375_v14 }
 0x11b   :  { %459 = vmatprep.subr.mxu1 %v374_v27  ;;  %v428_v21 = vpop.permute.xlu0 %427 }
 0x11c   :  { %460 = vmatpush1.msra.mxu1 %v373_v28 }
 0x11d   :  { %461 = vmatprep.subr.mxu1 %v372_v30  ;;  %v600_v27 = vpop.permute.xlu1 %599 }
 0x11e   :  { %462 = vmatpush1.msra.mxu1 %v371_v31 }
 0x11f   :  { %463 = vmatprep.subr.mxu1 %v370_v33  ;;  %v433_v24 = vpop.permute.xlu0 %432 }
 0x120   :  { %464 = vmatpush1.msra.mxu1 %v369_v34 }
 0x121   :  { %465 = vmatprep.subr.mxu1 %v368_v35 }
 0x122   :  { %466 = vmatpush1.msra.mxu1 %v367_v36 }
 0x123   :  { %467 = vmatprep.subr.mxu1 %v366_v38  ;;  %v438_v10 = vpop.permute.xlu0 %437  ;;  %v605_v38 = vpop.permute.xlu1 %604 }
 0x124   :  { %468 = vmatpush1.msra.mxu1 %v365_v39 }
 0x125   :  { %469 = vmatprep.subr.mxu1 %v364_v41 }
 0x126   :  { %470 = vmatpush1.msra.mxu1 %v363_v42 }
 0x127   :  { %471 = vmatprep.subr.mxu1 %v362_v43  ;;  %v443_v0 = vpop.permute.xlu0 %442 }
 0x128   :  { %472 = vmatpush1.msra.mxu1 %v361_v44 }
 0x129   :  { %473 = vmatprep.subr.mxu1 %v360_v62 }
 0x12a   :  { %474 = vmatpush1.msra.mxu1 %v359_v45 }
 0x12b   :  { %475 = vmatprep.subr.mxu1 %v358_v46 }
 0x12c   :  { %476 = vmatpush1.msra.mxu1 %v357_v61 }
 0x12d   :  { %510 = vmatmul.mubr.f32.vlgmr.msra.gmra.mxu1 %v389_v60 }
 0x12e   :  { %515 = vmatprep.mubr.f32.mxu1 %v716_v3 }
 0x131   :  { %516 = vmatmul.mubr.f32.gmra.mxu1 %v390_v58 }
 0x132   :  { %521 = vmatprep.mubr.f32.mxu1 %v716_v3 }
 0x135   :  { %522 = vmatmul.mubr.f32.gmra.mxu1 %v391_v59 }
 0x136   :  { %527 = vmatprep.mubr.f32.mxu1 %v716_v3 }
 0x139   :  { %528 = vmatmul.mubr.f32.gmra.mxu1 %v392_v47 }
 0x13a   :  { %533 = vmatprep.mubr.f32.mxu1 %v716_v3 }
 0x13d   :  { %534 = vmatmul.mubr.f32.gmra.mxu1 %v393_v48 }
 0x13e   :  { %539 = vmatprep.mubr.f32.mxu1 %v716_v3 }
 0x141   :  { %540 = vmatmul.mubr.f32.gmra.mxu1 %v394_v49 }
 0x142   :  { %545 = vmatprep.mubr.f32.mxu1 %v716_v3 }
 0x145   :  { %546 = vmatmul.mubr.f32.gmra.mxu1 %v395_v50 }
 0x146   :  { %551 = vmatprep.mubr.f32.mxu1 %v716_v3 }
 0x149   :  { %552 = vmatmul.mubr.f32.gmra.mxu1 %v396_v51  ;;  %v610_v51 = vpop.permute.xlu1 %609 }
 0x1ed   :  { %v511_v57 = vpop.f32.mrf.mxu1 }
 0x1ee   :  { %v512_v16 = vadd.f32 %v511_v57, %v408_v52 }
 0x1ef   :  { %v513_v20 = vpop.f32.mrf.mxu1 }
 0x1f0   :  { %v514_v13 = vadd.f32 %v513_v20, %v408_v52  ;;  %v558_v30 = vmax.f32 %v512_v16, 0.0  ;;  %v615_v20 = vpop.permute.xlu0 %614 }
 0x1f1   :  { %v517_v22 = vpop.f32.mrf.mxu1 }
 0x1f2   :  { %v518_v3 = vadd.f32 %v517_v22, %v413_v53  ;;  %v559_v8 = vmax.f32 %v514_v13, 0.0  ;;  %v622_v5 = vmul.f32 %v585_v56, %v558_v30 }
 0x1f3   :  { %v519_v19 = vpop.f32.mrf.mxu1 }
 0x1f4   :  { %v520_v26 = vadd.f32 %v519_v19, %v413_v53  ;;  %v560_v12 = vmax.f32 %v518_v3, 0.0  ;;  %v623_v1 = vmul.f32 %v585_v56, %v559_v8 }
 0x1f5   :  { %v523_v17 = vpop.f32.mrf.mxu1 }
 0x1f6   :  { %v524_v15 = vadd.f32 %v523_v17, %v418_v54  ;;  %v561_v31 = vmax.f32 %v520_v26, 0.0  ;;  %v624_v7 = vmul.f32 %v590_v18, %v560_v12 }
 0x1f7   :  { %v525_v25 = vpop.f32.mrf.mxu1 }
 0x1f8   :  { %v526_v28 = vadd.f32 %v525_v25, %v418_v54  ;;  %v562_v9 = vmax.f32 %v524_v15, 0.0  ;;  %v625_v4 = vmul.f32 %v590_v18, %v561_v31  ;;  %v638_v43 = vadd.f32 %v624_v7, %v622_v5 }
 0x1f9   :  { %v529_v14 = vpop.f32.mrf.mxu1 }
 0x1fa   :  { %v530_v11 = vadd.f32 %v529_v14, %v423_v55  ;;  %v563_v35 = vmax.f32 %v526_v28, 0.0  ;;  %v626_v39 = vmul.f32 %v595_v23, %v562_v9  ;;  %v651_v60 = vadd.f32 %v625_v4, %v623_v1 }
 0x1fb   :  { %v531_v29 = vpop.f32.mrf.mxu1  ;;  %v665_v1 = vstv %s1051_s6 }
 0x1fc   :  { %v532_v32 = vadd.f32 %v531_v29, %v423_v55  ;;  %v564_v6 = vmax.f32 %v530_v11, 0.0  ;;  %v627_v63 = vmul.f32 %v595_v23, %v563_v35  ;;  %v639_v58 = vadd.f32 %v638_v43, %v626_v39 }
 0x1fd   :  { %v535_v33 = vpop.f32.mrf.mxu1 }
 0x1fe   :  { %v536_v34 = vadd.f32 %v535_v33, %v428_v21  ;;  %v565_v2 = vmax.f32 %v532_v32, 0.0  ;;  %v628_v44 = vmul.f32 %v600_v27, %v564_v6  ;;  %v652_v52 = vadd.f32 %v651_v60, %v627_v63 }
 0x1ff   :  { %v537_v36 = vpop.f32.mrf.mxu1 }
 0x200   :  { %v538_v37 = vadd.f32 %v537_v36, %v428_v21  ;;  %v566_v40 = vmax.f32 %v536_v34, 0.0  ;;  %v629_v59 = vmul.f32 %v600_v27, %v565_v2  ;;  %v640_v53 = vadd.f32 %v639_v58, %v628_v44  ;;  %v620_v27 = vpop.permute.xlu1 %619 }
 0x201   :  { %v541_v41 = vpop.f32.mrf.mxu1  ;;  %v718_v36 = vmov 1966171168  }
 0x202   :  { %v542_v42 = vadd.f32 %v541_v41, %v433_v24  ;;  %v567_v62 = vmax.f32 %v538_v37, 0.0  ;;  %v630_v47 = vmul.f32 %v605_v38, %v566_v40  ;;  %v653_v21 = vadd.f32 %v652_v52, %v629_v59 }
 0x203   :  { %v543_v45 = vpop.f32.mrf.mxu1  ;;  %v672_v5 = vunpack.c.l.s4 %v718_v36  ;;  %v674_v37 = vlaneseq }
 0x204   :  { %v568_v46 = vmax.f32 %v542_v42, 0.0  ;;  %v544_v61 = vadd.f32 %v543_v45, %v433_v24  ;;  %v631_v54 = vmul.f32 %v605_v38, %v567_v62  ;;  %v641_v22 = vadd.f32 %v640_v53, %v630_v47 }
 0x205   :  { %v547_v48 = vpop.f32.mrf.mxu1  ;;  %v673_v40 = vunpack.c.0.s8 %v672_v5  ;;  %v675_v41 = vshrl.u32 %v674_v37, 7  ;;  %vm688_vm1 = vcmp.lt.s32.totalorder %v674_v37, 256 }
 0x206   :  { %v569_v49 = vmax.f32 %v544_v61, 0.0  ;;  %v548_v50 = vadd.f32 %v547_v48, %v438_v10  ;;  %v632_v56 = vmul.f32 %v610_v51, %v568_v46  ;;  %v654_v25 = vadd.f32 %v653_v21, %v631_v54 }
 0x207   :  { %v549_v55 = vpop.f32.mrf.mxu1  ;;  %v676_v63 = vsub.s32 %v673_v40, %v675_v41 }
 0x208   :  { %v570_v57 = vmax.f32 %v548_v50, 0.0  ;;  %v550_v18 = vadd.f32 %v549_v55, %v438_v10  ;;  %v633_v23 = vmul.f32 %v610_v51, %v569_v49  ;;  %v642_v26 = vadd.f32 %v641_v22, %v632_v56 }
 0x209   :  { %v553_v19 = vpop.f32.mrf.mxu1 }
 0x20a   :  { %v634_v17 = vmul.f32 %v615_v20, %v570_v57  ;;  %v571_v24 = vmax.f32 %v550_v18, 0.0  ;;  %v554_v3 = vadd.f32 %v553_v19, %v443_v0  ;;  %v655_v12 = vadd.f32 %v654_v25, %v633_v23 }
 0x20b   :  { %v555_v16 = vpop.f32.mrf.mxu1 }
 0x20c   :  { %v635_v15 = vmul.f32 %v615_v20, %v571_v24  ;;  %v572_v14 = vmax.f32 %v554_v3, 0.0  ;;  %v556_v13 = vadd.f32 %v555_v16, %v443_v0  ;;  %v643_v28 = vadd.f32 %v642_v26, %v634_v17 }
 0x20e   :  { %v636_v11 = vmul.f32 %v620_v27, %v572_v14  ;;  %v573_v29 = vmax.f32 %v556_v13, 0.0  ;;  %v656_v30 = vadd.f32 %v655_v12, %v635_v15 }
 0x210   :  { %v644_v10 = vadd.f32 %v643_v28, %v636_v11  ;;  %v637_v31 = vmul.f32 %v620_v27, %v573_v29 }
 0x212   :  { %v645_v9 = vrot.slane %v644_v10, 4  ;;  %v657_v32 = vadd.f32 %v656_v30, %v637_v31 }
 0x214   :  { %v646_v33 = vadd.f32 %v645_v9, %v644_v10  ;;  %v658_v8 = vrot.slane %v657_v32, 4 }
 0x216   :  { %v647_v34 = vrot.slane %v646_v33, 2  ;;  %v659_v7 = vadd.f32 %v658_v8, %v657_v32 }
 0x218   :  { %v648_v35 = vadd.f32 %v647_v34, %v646_v33  ;;  %v660_v6 = vrot.slane %v659_v7, 2 }
 0x21a   :  { %v649_v38 = vrot.slane %v648_v35, 1  ;;  %v661_v4 = vadd.f32 %v660_v6, %v659_v7 }
 0x21c   :  { %v650_v39 = vadd.f32 %v649_v38, %v648_v35  ;;  %v662_v2 = vrot.slane %v661_v4, 1 }
 0x21e   :  { %v663_v42 = vadd.f32 %v662_v2, %v661_v4  ;;  %v666_v0 = vadd.f32 %v665_v1, %v650_v39 }
 0x220   :  { %v667_v43 = vadd.f32 %v665_v1, %v663_v42 }
 0x222   :  { %v670_v44 = vcombine.low %v666_v0, %v667_v43 }
 0x224   :  { %v677_v62 = vrot.slane %v670_v44, %v676_v63 }
 0x226   :  { %v684_v45 = vrot.slane %v677_v62, %v676_v63 }
 0x228   :  { %690 = vst.msk [vmem:[%s1052_s7] sm:$0x3] %vm688_vm1, %v684_v45 }

</bundles_post_ra>
